<compile_context>
chip_gen: v6e
topology: v6e:2x2x1
jax: 0.10.0
libtpu: 0.0.40
codegen_flags: <defaults>
</compile_context>

<pallas_src>
import functools

import jax
import jax.numpy as jnp
from jax import lax
from jax.experimental import pallas as pl
from jax.experimental.pallas import tpu as pltpu


def _fused_qa_cosine_kernel(kernel_sizes, TB, L, c_pad, x_ref, w_ref, b_ref, o_ref):
    # x_ref : (2*TB*L, E) bf16 -- rows = [query block (TB seqs * L) | answer block (TB*L)],
    #                             each sequence contiguous along L.
    # w_ref : (E, n_taps*c_pad) bf16 -- tap-major packed conv weights, channels zero-padded
    #                                   to 128 lanes per tap.
    # b_ref : (1, len(Ks)*c_pad) f32 -- per-kernel-size bias, zero-padded per 128-lane block.
    # o_ref : (TB, 1) f32 -- per-example cosine similarity for this batch block.
    n_seq = 2 * TB                                     # query sequences then answer sequences

    xf = x_ref[...]                                    # (2*TB*L, E) bf16, matmul-ready
    # Single MXU matmul covering every tap of every kernel size (lane-dense N).
    y = jnp.dot(xf, w_ref[...], preferred_element_type=jnp.float32)  # (2*TB*L, n_taps*c_pad)

    dot = jnp.zeros((TB, 1), jnp.float32)
    qn2 = jnp.zeros((TB, 1), jnp.float32)
    an2 = jnp.zeros((TB, 1), jnp.float32)

    tap0 = 0
    for ki, ks in enumerate(kernel_sizes):             # static python loop (2 branches)
        T = L - ks + 1
        acc = jnp.zeros((n_seq, T, c_pad), jnp.float32)
        # Convolution = shifted-slice accumulation of the per-tap 128-lane blocks of `y`;
        # lane slices are 128-aligned, shifts are cheap VPU/XLU work on the f32 tile.
        for t in range(ks):
            c0 = (tap0 + t) * c_pad
            yt = y[:, c0:c0 + c_pad].reshape(n_seq, L, c_pad)
            acc = acc + yt[:, t:t + T, :]
        tap0 += ks

        bias = b_ref[:, ki * c_pad:(ki + 1) * c_pad]   # (1, c_pad) f32
        acc = jnp.maximum(acc + bias, 0.0)             # bias + ReLU (padded lanes stay 0)
        pooled = jnp.max(acc, axis=1)                  # max-pool over time -> (2*TB, c_pad)

        qp = pooled[:TB]                               # query features
        ap = pooled[TB:]                               # answer features
        # Zero-padded channels contribute exactly 0, so summing over all c_pad lanes
        # equals summing over the valid kernel_num channels (the implicit concat).
        dot = dot + jnp.sum(qp * ap, axis=1, keepdims=True)
        qn2 = qn2 + jnp.sum(qp * qp, axis=1, keepdims=True)
        an2 = an2 + jnp.sum(ap * ap, axis=1, keepdims=True)

    eps = jnp.float32(1e-07)
    # cosine_similarity(dim=1, eps): dot / sqrt(clamp_min(|q|^2 * |a|^2, eps^2)).
    # rsqrt goes to the EUP slot (effectively free vs. a VPU divide chain).
    o_ref[...] = dot * lax.rsqrt(jnp.maximum(qn2 * an2, eps * eps))


def convolution_cosine_similarity(query, answer, emb_table, conv_params, kernel_sizes):
    B, L = query.shape
    E = emb_table.shape[1]
    C = conv_params[0][0].shape[0]                     # kernel_num
    c_pad = ((C + 127) // 128) * 128                   # lane-dense N (multiple of 128)
    n_taps = sum(kernel_sizes)
    nK = len(kernel_sizes)

    # Batch tile for the parallel grid. The (TB, 1) output block's second-to-last dim
    # must be a multiple of 8 unless it covers the whole (padded) batch.
    TB = B if B <= 8 else 8
    B_pad = ((B + TB - 1) // TB) * TB
    nb = B_pad // TB
    # NOTE(v7x): at these sizes the per-step block (2*TB*L*E activations + packed weights
    # + the (2*TB*L, n_taps*128) f32 matmul result, double-buffered) is well under 1 MiB.
    # When scaling B/L/kernel_num keep it below ~24-32 MiB to fit v7x's 64 MiB VMEM.

    # --- plain-JAX glue: token layout + single embedding gather (data-dependent take) ---
    qt, at = query, answer
    if B_pad != B:
        pad = ((0, B_pad - B), (0, 0))
        qt = jnp.pad(qt, pad)                          # pad token 0 (valid row); sims dropped
        at = jnp.pad(at, pad)
    # Row order per grid block i: [q_{i*TB}..q_{i*TB+TB-1} (L rows each) | a_... (L rows each)]
    tokens = jnp.concatenate([qt.reshape(nb, TB, L), at.reshape(nb, TB, L)], axis=1)
    x_all = jnp.take(emb_table, tokens.reshape(-1), axis=0).astype(jnp.bfloat16)  # (nb*2TB*L, E)

    # --- conv params packed for ONE matmul: tap-major (E, n_taps*c_pad) bf16 weights ---
    # PyTorch Conv2d weight (C, 1, ks, E): out[b, c, w] = sum_{t,e} W[c,0,t,e] * x[b, w+t, e]
    w_cols, b_cols = [], []
    for (W, b), ks in zip(conv_params, kernel_sizes):
        Wt = jnp.transpose(W.reshape(C, ks, E), (1, 2, 0))              # (ks, E, C)
        for t in range(ks):
            w_cols.append(jnp.pad(Wt[t], ((0, 0), (0, c_pad - C))))     # (E, c_pad)
        b_cols.append(jnp.pad(b.astype(jnp.float32), (0, c_pad - C)))   # (c_pad,)
    w_all = jnp.concatenate(w_cols, axis=1).astype(jnp.bfloat16)        # (E, n_taps*c_pad)
    b_all = jnp.concatenate(b_cols, axis=0).reshape(1, nK * c_pad)      # (1, nK*c_pad) f32

    kernel = functools.partial(_fused_qa_cosine_kernel, tuple(kernel_sizes), TB, L, c_pad)
    sims = pl.pallas_call(
        kernel,
        grid=(nb,),
        in_specs=[
            pl.BlockSpec((2 * TB * L, E), lambda i: (i, 0)),            # activations
            pl.BlockSpec((E, n_taps * c_pad), lambda i: (0, 0)),        # packed conv weights
            pl.BlockSpec((1, nK * c_pad), lambda i: (0, 0)),            # packed biases
        ],
        out_specs=pl.BlockSpec((TB, 1), lambda i: (i, 0)),
        out_shape=jax.ShapeDtypeStruct((B_pad, 1), jnp.float32),
        compiler_params=pltpu.CompilerParams(dimension_semantics=("parallel",)),
    )(x_all, w_all, b_all)

    # Final reduction over the (tiny) per-example similarities kept in the wrapper so the
    # batch grid axis can remain "parallel" (v7x megacore); padded batch rows are dropped.
    return jnp.sum(sims[:B, 0])


def _reference_forward(query, answer, emb_table, conv_params, kernel_sizes):
    # Pure-JAX f32 reference mirroring the PyTorch module (for a loose sanity check).
    def encode(tokens):
        x = jnp.take(emb_table, tokens, axis=0)        # (B, L, E)
        feats = []
        for (W, b), ks in zip(conv_params, kernel_sizes):
            T = x.shape[1] - ks + 1
            conv = b[None, None, :]
            for t in range(ks):
                conv = conv + jnp.einsum('ble,ce->blc', x[:, t:t + T], W[:, 0, t])
            feats.append(jnp.max(jnp.maximum(conv, 0.0), axis=1))
        return jnp.concatenate(feats, axis=1)

    qv, av = encode(query), encode(answer)
    dot = jnp.sum(qv * av, axis=1)
    nq = jnp.sum(qv * qv, axis=1)
    na = jnp.sum(av * av, axis=1)
    sim = dot / jnp.sqrt(jnp.maximum(nq * na, jnp.float32(1e-07) ** 2))
    return jnp.sum(sim)


if __name__ == "__main__":
    # Small, deterministic synthetic setup consistent with the module's __init__.
    vocab_size = 50
    embedding_size = 32
    kernel_sizes = (2, 3)
    kernel_num = 16
    B, L = 2, 8

    key = jax.random.PRNGKey(0)
    k_emb, k_q, k_a, k_params = jax.random.split(key, 4)

    # nn.Embedding default init: N(0, 1)
    emb_table = jax.random.normal(k_emb, (vocab_size, embedding_size), jnp.float32)

    # nn.Conv2d(1, kernel_num, (k, E)) params: uniform(-1/sqrt(fan_in), 1/sqrt(fan_in))
    conv_params = []
    pkeys = jax.random.split(k_params, 2 * len(kernel_sizes))
    for i, ks in enumerate(kernel_sizes):
        fan_in = 1 * ks * embedding_size
        bound = 1.0 / (fan_in ** 0.5)
        W = jax.random.uniform(pkeys[2 * i], (kernel_num, 1, ks, embedding_size),
                               jnp.float32, -bound, bound)
        b = jax.random.uniform(pkeys[2 * i + 1], (kernel_num,), jnp.float32, -bound, bound)
        conv_params.append((W, b))

    query = jax.random.randint(k_q, (B, L), 0, vocab_size, dtype=jnp.int32)
    answer = jax.random.randint(k_a, (B, L), 0, vocab_size, dtype=jnp.int32)

    fwd = jax.jit(functools.partial(convolution_cosine_similarity,
                                    kernel_sizes=kernel_sizes))
    qa_sim_sum = fwd(query, answer, emb_table, conv_params)
    jax.block_until_ready(qa_sim_sum)

    # Loose tolerance: kernel uses bf16 MXU operands with f32 accumulation.
    ref = _reference_forward(query, answer, emb_table, conv_params, kernel_sizes)
    assert abs(float(qa_sim_sum) - float(ref)) < 5e-2, (float(qa_sim_sum), float(ref))
    print("KERNEL_OK")
</pallas_src>

<mosaic_0001>
module attributes {stable_mosaic.version = 11 : i64} {
  func.func @_fused_qa_cosine_kernel(%arg0: i32, %arg1: memref<32x32xbf16, #tpu.memory_space<vmem>>, %arg2: memref<32x640xbf16, #tpu.memory_space<vmem>>, %arg3: memref<1x256xf32, #tpu.memory_space<vmem>>, %arg4: memref<2x1xf32, #tpu.memory_space<vmem>>) attributes {dimension_semantics = [#tpu.dimension_semantics<parallel>], iteration_bounds = array<i64: 1>, scalar_prefetch = 0 : i64, scratch_operands = 0 : i64, tpu.core_type = #tpu.core_type<tc>, window_params = [{transform_indices = @transform_0, window_bounds = array<i64: 32, 32>}, {pipeline_mode = #tpu.pipeline_mode<synchronous>, transform_indices = @transform_1, window_bounds = array<i64: 32, 640>}, {pipeline_mode = #tpu.pipeline_mode<synchronous>, transform_indices = @transform_2, window_bounds = array<i64: 1, 256>}, {transform_indices = @transform_3, window_bounds = array<i64: 2, 1>}]} {
    %c0 = arith.constant 0 : index
    %c0_0 = arith.constant 0 : index
    %0 = vector.load %arg1[%c0, %c0_0] : memref<32x32xbf16, #tpu.memory_space<vmem>>, vector<32x32xbf16>
    %c0_1 = arith.constant 0 : index
    %c0_2 = arith.constant 0 : index
    %1 = vector.load %arg2[%c0_1, %c0_2] : memref<32x640xbf16, #tpu.memory_space<vmem>>, vector<32x640xbf16>
    %cst = arith.constant dense<0.000000e+00> : vector<32x640xf32>
    %2 = tpu.matmul %0, %1, %cst {dimension_numbers = #tpu.dot_dimension_numbers<[1], [0], [0], [1], [0, 0, 1, 1], [], []>} : vector<32x32xbf16>, vector<32x640xbf16>, vector<32x640xf32> -> vector<32x640xf32>
    %cst_3 = arith.constant 0.000000e+00 : f32
    %3 = vector.broadcast %cst_3 : f32 to vector<2x1xf32>
    %cst_4 = arith.constant 0.000000e+00 : f32
    %4 = vector.broadcast %cst_4 : f32 to vector<2x1xf32>
    %cst_5 = arith.constant 0.000000e+00 : f32
    %5 = vector.broadcast %cst_5 : f32 to vector<2x1xf32>
    %cst_6 = arith.constant 0.000000e+00 : f32
    %6 = vector.broadcast %cst_6 : f32 to vector<4x7x128xf32>
    %7 = vector.extract_strided_slice %2 {offsets = [0, 0], sizes = [32, 128], strides = [1, 1]} : vector<32x640xf32> to vector<32x128xf32>
    %8 = vector.shape_cast %7 : vector<32x128xf32> to vector<4x8x128xf32>
    %9 = vector.extract_strided_slice %8 {offsets = [0, 0, 0], sizes = [4, 7, 128], strides = [1, 1, 1]} : vector<4x8x128xf32> to vector<4x7x128xf32>
    %10 = arith.addf %6, %9 : vector<4x7x128xf32>
    %11 = vector.extract_strided_slice %2 {offsets = [0, 128], sizes = [32, 128], strides = [1, 1]} : vector<32x640xf32> to vector<32x128xf32>
    %12 = vector.shape_cast %11 : vector<32x128xf32> to vector<4x8x128xf32>
    %13 = vector.extract_strided_slice %12 {offsets = [0, 1, 0], sizes = [4, 7, 128], strides = [1, 1, 1]} : vector<4x8x128xf32> to vector<4x7x128xf32>
    %14 = arith.addf %10, %13 : vector<4x7x128xf32>
    %c0_7 = arith.constant 0 : index
    %c0_8 = arith.constant 0 : index
    %15 = vector.load %arg3[%c0_7, %c0_8] : memref<1x256xf32, #tpu.memory_space<vmem>>, vector<1x128xf32>
    %16 = vector.shape_cast %15 : vector<1x128xf32> to vector<1x1x128xf32>
    %17 = vector.broadcast %16 : vector<1x1x128xf32> to vector<4x7x128xf32>
    %18 = arith.addf %14, %17 : vector<4x7x128xf32>
    %cst_9 = arith.constant 0.000000e+00 : f32
    %19 = vector.broadcast %cst_9 : f32 to vector<4x7x128xf32>
    %20 = arith.maximumf %18, %19 : vector<4x7x128xf32>
    %cst_10 = arith.constant dense<0xFF800000> : vector<4x128xf32>
    %21 = vector.multi_reduction <maximumf>, %20, %cst_10 [1] : vector<4x7x128xf32> to vector<4x128xf32>
    %22 = vector.extract_strided_slice %21 {offsets = [0, 0], sizes = [2, 128], strides = [1, 1]} : vector<4x128xf32> to vector<2x128xf32>
    %23 = vector.extract_strided_slice %21 {offsets = [2, 0], sizes = [2, 128], strides = [1, 1]} : vector<4x128xf32> to vector<2x128xf32>
    %24 = arith.mulf %22, %23 : vector<2x128xf32>
    %cst_11 = arith.constant dense<0.000000e+00> : vector<2xf32>
    %25 = vector.multi_reduction <add>, %24, %cst_11 [1] : vector<2x128xf32> to vector<2xf32>
    %26 = vector.shape_cast %25 : vector<2xf32> to vector<2x1xf32>
    %27 = arith.addf %3, %26 : vector<2x1xf32>
    %28 = arith.mulf %22, %22 : vector<2x128xf32>
    %cst_12 = arith.constant dense<0.000000e+00> : vector<2xf32>
    %29 = vector.multi_reduction <add>, %28, %cst_12 [1] : vector<2x128xf32> to vector<2xf32>
    %30 = vector.shape_cast %29 : vector<2xf32> to vector<2x1xf32>
    %31 = arith.addf %4, %30 : vector<2x1xf32>
    %32 = arith.mulf %23, %23 : vector<2x128xf32>
    %cst_13 = arith.constant dense<0.000000e+00> : vector<2xf32>
    %33 = vector.multi_reduction <add>, %32, %cst_13 [1] : vector<2x128xf32> to vector<2xf32>
    %34 = vector.shape_cast %33 : vector<2xf32> to vector<2x1xf32>
    %35 = arith.addf %5, %34 : vector<2x1xf32>
    %cst_14 = arith.constant 0.000000e+00 : f32
    %36 = vector.broadcast %cst_14 : f32 to vector<4x6x128xf32>
    %37 = vector.extract_strided_slice %2 {offsets = [0, 256], sizes = [32, 128], strides = [1, 1]} : vector<32x640xf32> to vector<32x128xf32>
    %38 = vector.shape_cast %37 : vector<32x128xf32> to vector<4x8x128xf32>
    %39 = vector.extract_strided_slice %38 {offsets = [0, 0, 0], sizes = [4, 6, 128], strides = [1, 1, 1]} : vector<4x8x128xf32> to vector<4x6x128xf32>
    %40 = arith.addf %36, %39 : vector<4x6x128xf32>
    %41 = vector.extract_strided_slice %2 {offsets = [0, 384], sizes = [32, 128], strides = [1, 1]} : vector<32x640xf32> to vector<32x128xf32>
    %42 = vector.shape_cast %41 : vector<32x128xf32> to vector<4x8x128xf32>
    %43 = vector.extract_strided_slice %42 {offsets = [0, 1, 0], sizes = [4, 6, 128], strides = [1, 1, 1]} : vector<4x8x128xf32> to vector<4x6x128xf32>
    %44 = arith.addf %40, %43 : vector<4x6x128xf32>
    %45 = vector.extract_strided_slice %2 {offsets = [0, 512], sizes = [32, 128], strides = [1, 1]} : vector<32x640xf32> to vector<32x128xf32>
    %46 = vector.shape_cast %45 : vector<32x128xf32> to vector<4x8x128xf32>
    %47 = vector.extract_strided_slice %46 {offsets = [0, 2, 0], sizes = [4, 6, 128], strides = [1, 1, 1]} : vector<4x8x128xf32> to vector<4x6x128xf32>
    %48 = arith.addf %44, %47 : vector<4x6x128xf32>
    %c0_15 = arith.constant 0 : index
    %c128 = arith.constant 128 : index
    %49 = vector.load %arg3[%c0_15, %c128] : memref<1x256xf32, #tpu.memory_space<vmem>>, vector<1x128xf32>
    %50 = vector.shape_cast %49 : vector<1x128xf32> to vector<1x1x128xf32>
    %51 = vector.broadcast %50 : vector<1x1x128xf32> to vector<4x6x128xf32>
    %52 = arith.addf %48, %51 : vector<4x6x128xf32>
    %cst_16 = arith.constant 0.000000e+00 : f32
    %53 = vector.broadcast %cst_16 : f32 to vector<4x6x128xf32>
    %54 = arith.maximumf %52, %53 : vector<4x6x128xf32>
    %cst_17 = arith.constant dense<0xFF800000> : vector<4x128xf32>
    %55 = vector.multi_reduction <maximumf>, %54, %cst_17 [1] : vector<4x6x128xf32> to vector<4x128xf32>
    %56 = vector.extract_strided_slice %55 {offsets = [0, 0], sizes = [2, 128], strides = [1, 1]} : vector<4x128xf32> to vector<2x128xf32>
    %57 = vector.extract_strided_slice %55 {offsets = [2, 0], sizes = [2, 128], strides = [1, 1]} : vector<4x128xf32> to vector<2x128xf32>
    %58 = arith.mulf %56, %57 : vector<2x128xf32>
    %cst_18 = arith.constant dense<0.000000e+00> : vector<2xf32>
    %59 = vector.multi_reduction <add>, %58, %cst_18 [1] : vector<2x128xf32> to vector<2xf32>
    %60 = vector.shape_cast %59 : vector<2xf32> to vector<2x1xf32>
    %61 = arith.addf %27, %60 : vector<2x1xf32>
    %62 = arith.mulf %56, %56 : vector<2x128xf32>
    %cst_19 = arith.constant dense<0.000000e+00> : vector<2xf32>
    %63 = vector.multi_reduction <add>, %62, %cst_19 [1] : vector<2x128xf32> to vector<2xf32>
    %64 = vector.shape_cast %63 : vector<2xf32> to vector<2x1xf32>
    %65 = arith.addf %31, %64 : vector<2x1xf32>
    %66 = arith.mulf %57, %57 : vector<2x128xf32>
    %cst_20 = arith.constant dense<0.000000e+00> : vector<2xf32>
    %67 = vector.multi_reduction <add>, %66, %cst_20 [1] : vector<2x128xf32> to vector<2xf32>
    %68 = vector.shape_cast %67 : vector<2xf32> to vector<2x1xf32>
    %69 = arith.addf %35, %68 : vector<2x1xf32>
    %70 = arith.mulf %65, %69 : vector<2x1xf32>
    %cst_21 = arith.constant 1.000000e-07 : f32
    %cst_22 = arith.constant 1.000000e-07 : f32
    %71 = arith.mulf %cst_21, %cst_22 : f32
    %72 = vector.broadcast %71 : f32 to vector<2x1xf32>
    %73 = arith.maximumf %70, %72 : vector<2x1xf32>
    %74 = math.rsqrt %73 : vector<2x1xf32>
    %75 = arith.mulf %61, %74 : vector<2x1xf32>
    %c0_23 = arith.constant 0 : index
    %c0_24 = arith.constant 0 : index
    %76 = vector.load %arg4[%c0_23, %c0_24] : memref<2x1xf32, #tpu.memory_space<vmem>>, vector<2x1xf32>
    tpu.vector_store %arg4[%c0_23, %c0_24], %75 {strides = array<i32>} : memref<2x1xf32, #tpu.memory_space<vmem>>, vector<2x1xf32>,
    return
  }
  func.func @transform_0(%arg0: i32) -> (i32, i32) {
    %c0_i32 = arith.constant 0 : i32
    %c0_i32_0 = arith.constant 0 : i32
    return %arg0, %c0_i32 : i32, i32
  }
  func.func @transform_1(%arg0: i32) -> (i32, i32) {
    %c0_i32 = arith.constant 0 : i32
    %c0_i32_0 = arith.constant 0 : i32
    %c0_i32_1 = arith.constant 0 : i32
    return %c0_i32, %c0_i32_0 : i32, i32
  }
  func.func @transform_2(%arg0: i32) -> (i32, i32) {
    %c0_i32 = arith.constant 0 : i32
    %c0_i32_0 = arith.constant 0 : i32
    %c0_i32_1 = arith.constant 0 : i32
    return %c0_i32, %c0_i32_0 : i32, i32
  }
  func.func @transform_3(%arg0: i32) -> (i32, i32) {
    %c0_i32 = arith.constant 0 : i32
    %c0_i32_0 = arith.constant 0 : i32
    return %arg0, %c0_i32 : i32, i32
  }
}

</mosaic_0001>

<bundles_post_ra>
// kernel: convolution_cosine_similarity.1
= control target key start
LH: loop header
LB: loop body
LE: loop exit
PB: predicated region body
PF: predicated region fallthrough
CT: control target
= control target key end

     0   :  { %v522_v1 = vmov 0   ;;  %vm93_vm0 = vcmask 261120   ;;  %vm290_vm1 = vcmask 1046528   ;;  %vm402_vm2 = vcmask 1045504   ;;  %s614_s1 = inlined_call_operand.vmem [shape: bf16[32,640], index: 1, kind: input, shape index: {}]   ;;  %s615_s0 = inlined_call_operand.vmem [shape: bf16[32,32], index: 0, kind: input, shape index: {}]   ;;  %s616_s2 = inlined_call_operand.vmem [shape: f32[1,256], index: 2, kind: input, shape index: {}]   ;;  %s617_s3 = inlined_call_operand.vmem [shape: f32[2,1], index: 3, kind: output, shape index: {}]  }
   0x1   :  { %v504_v0 = vld [vmem:[%s614_s1 + $0x2c] ss:$20 sps:$4 sm:$0xff]   ;;  %132 = vmatprep.mubr.bf16.mxu0 %v522_v1  ;;  %185 = vmatprep.mubr.bf16.mxu1 %v522_v1  ;;  %v506_v2 = vld [vmem:[%s614_s1 + $0x28] ss:$20 sps:$4 sm:$0xff]   ;;  %v509_v4 = vld [vmem:[%s614_s1 + $0x4] ss:$20 sps:$4 sm:$0xff]  }
   0x2   :  { %112 = vmatprep.subr.bf16.mxu0 %v504_v0  ;;  %v507_v3 = vld [vmem:[%s614_s1 + $0x34] ss:$20 sps:$4 sm:$0xff]   ;;  %v511_v5 = vld [vmem:[%s614_s1 + $0x30] ss:$20 sps:$4 sm:$0xff]   ;;  %v513_v7 = vld [vmem:[%s614_s1 + $0xc] ss:$20 sps:$4 sm:$0xff]  }
   0x3   :  { %113 = vmatpush1.bf16.msra.mxu0 %v506_v2  ;;  %v512_v6 = vld [vmem:[%s614_s1] ss:$20 sps:$4 sm:$0xff]   ;;  %165 = vmatprep.subr.bf16.mxu1 %v507_v3  ;;  %v516_v9 = vld [vmem:[%s614_s1 + $0x8] ss:$20 sps:$4 sm:$0xff]   ;;  %v517_v10 = vld [vmem:[%s614_s1 + $0x38] ss:$20 sps:$4 sm:$0xff]  }
   0x4   :  { %114 = vmatprep.subr.bf16.mxu0 %v509_v4  ;;  %166 = vmatpush1.bf16.msra.mxu1 %v511_v5  ;;  %v515_v8 = vld [vmem:[%s615_s0] sm:$0xff]   ;;  %v518_v12 = vld [vmem:[%s615_s0 + $0x8] sm:$0xff]   ;;  %vm323_vm3 = vcmask 1041409   ;;  %vm326_vm4 = vcmask 1041408   ;;  %vm465_vm5 = vcmask 1024  }
   0x5   :  { %167 = vmatprep.subr.bf16.mxu1 %v513_v7  ;;  %v519_v11 = vld [vmem:[%s614_s1 + $0x10] ss:$20 sps:$4 sm:$0xff]   ;;  %v489_v17 = vld [vmem:[%s616_s2] ss:$0 sm:$0xff]  ;;  %v490_v59 = vld [vmem:[%s616_s2 + $0x1] ss:$0 sm:$0xff] }
   0x7   :  { %115 = vmatpush1.bf16.msra.mxu0 %v512_v6 }
   0x8   :  { %168 = vmatpush1.bf16.msra.mxu1 %v516_v9  ;;  %495 = vmatprep.subr.bf16.mxu0 %v517_v10 }
   0xa   :  { %483 = vmatmul.mubr.msk.bf16.vlgmr.msra.gmra.mxu0 %vm93_vm0, %v515_v8 }
   0xb   :  { %496 = vmatpush3.bf16.msra.mxu0 %v517_v10  ;;  %142 = vmatprep.mubr.bf16.mxu0 %v522_v1 }
   0xc   :  { %485 = vmatmul.mubr.msk.bf16.vlgmr.msra.gmra.mxu1 %vm93_vm0, %v515_v8  ;;  %497 = vmatprep.subr.bf16.mxu0 %v519_v11 }
   0xd   :  { %195 = vmatprep.mubr.bf16.mxu1 %v522_v1 }
   0xf   :  { %498 = vmatpush3.bf16.msra.mxu0 %v519_v11 }
  0x12   :  { %484 = vmatmul.mubr.msk.bf16.gmra.mxu0 %vm93_vm0, %v518_v12 }
  0x13   :  { %499 = vmatprep.mubr.msk.bf16.mxu0 %vm93_vm0, %v515_v8 }
  0x14   :  { %486 = vmatmul.mubr.msk.bf16.gmra.mxu1 %vm93_vm0, %v518_v12 }
  0x1a   :  { %500 = vmatmul.mubr.msk.bf16.vlgmr.msra.gmra.mxu0 %vm93_vm0, %v518_v12 }
  0xca   :  { %v134_v13 = vpop.f32.mrf.mxu0 }
  0xcc   :  { %v136_v14 = vpop.f32.mrf.mxu0  ;;  %v187_v15 = vpop.f32.mrf.mxu1 }
  0xcd   :  { %v263_v16 = vrot.slane %v136_v14, 1 }
  0xce   :  { %v138_v18 = vpop.f32.mrf.mxu0  ;;  %v189_v19 = vpop.f32.mrf.mxu1 }
  0xcf   :  { %v271_v20 = vadd.f32 %v263_v16, %v134_v13  ;;  %v359_v41 = vrot.slane %v189_v19, 1 }
  0xd0   :  { %v140_v21 = vpop.f32.mrf.mxu0  ;;  %v191_v22 = vpop.f32.mrf.mxu1 }
  0xd1   :  { %v282_v23 = vadd.f32 %v489_v17, %v271_v20  ;;  %v264_v24 = vrot.slane %v140_v21, 1  ;;  %v367_v57 = vadd.f32 %v359_v41, %v187_v15 }
  0xd2   :  { %v144_v25 = vpop.f32.mrf.mxu0  ;;  %v193_v26 = vpop.f32.mrf.mxu1 }
  0xd3   :  { %v286_v27 = vmax.f32 %v282_v23, 0.0  ;;  %v272_v28 = vadd.f32 %v264_v24, %v138_v18  ;;  %v360_v42 = vrot.slane %v193_v26, 1 }
  0xd4   :  { %v146_v29 = vpop.f32.mrf.mxu0  ;;  %v197_v30 = vpop.f32.mrf.mxu1 }
  0xd5   :  { %v291_v31 = vsel %vm290_vm1, %v286_v27, -inf  ;;  %v283_v32 = vadd.f32 %v489_v17, %v272_v28  ;;  %v265_v33 = vrot.slane %v146_v29, 1  ;;  %v368_v62 = vadd.f32 %v360_v42, %v191_v22 }
  0xd6   :  { %v292_v34 = vrot.slane %v291_v31, 4  ;;  %v148_v35 = vpop.f32.mrf.mxu0  ;;  %v199_v36 = vpop.f32.mrf.mxu1 }
  0xd7   :  { %v287_v37 = vmax.f32 %v283_v32, 0.0  ;;  %v273_v38 = vadd.f32 %v265_v33, %v144_v25  ;;  %v361_v39 = vrot.slane %v199_v36, 1 }
  0xd8   :  { %v293_v40 = vmax.f32 %v291_v31, %v292_v34  ;;  %v150_v43 = vpop.f32.mrf.mxu0  ;;  %v201_v44 = vpop.f32.mrf.mxu1 }
  0xd9   :  { %v298_v45 = vsel %vm290_vm1, %v287_v37, -inf  ;;  %v284_v46 = vadd.f32 %v489_v17, %v273_v38  ;;  %v369_v47 = vadd.f32 %v361_v39, %v197_v30  ;;  %v266_v48 = vrot.slane %v150_v43, 1 }
  0xda   :  { %v294_v49 = vrot.slane %v293_v40, 2  ;;  %v299_v50 = vrot.slane %v298_v45, 4  ;;  %v501_v51 = vpop.f32.mrf.mxu0  ;;  %v203_v52 = vpop.f32.mrf.mxu1 }
  0xdb   :  { %v288_v53 = vmax.f32 %v284_v46, 0.0  ;;  %v274_v54 = vadd.f32 %v266_v48, %v148_v35  ;;  %v377_v55 = vrot.slane %v501_v51, 2  ;;  %v362_v56 = vrot.slane %v203_v52, 1 }
  0xdc   :  { %v300_v58 = vmax.f32 %v298_v45, %v299_v50  ;;  %v240_v60 = vpop.f32.mrf.mxu0  ;;  %v295_v61 = vmax.f32 %v293_v40, %v294_v49 }
  0xdd   :  { %v305_v63 = vsel %vm290_vm1, %v288_v53, -inf  ;;  %v285_v0 = vadd.f32 %v489_v17, %v274_v54  ;;  %v385_v1 = vadd.f32 %v377_v55, %v369_v47  ;;  %v375_v4 = vrot.slane %v240_v60, 2 }
  0xde   :  { %v301_v2 = vrot.slane %v300_v58, 2  ;;  %v306_v3 = vrot.slane %v305_v63, 4  ;;  %v502_v5 = vpop.f32.mrf.mxu0  ;;  %v296_v6 = vrot.slane %v295_v61, 1  ;;  %v370_v9 = vadd.f32 %v362_v56, %v201_v44 }
  0xdf   :  { %v289_v7 = vmax.f32 %v285_v0, 0.0  ;;  %v396_v8 = vadd.f32 %v490_v59, %v385_v1  ;;  %v378_v10 = vrot.slane %v502_v5, 2  ;;  %v383_v12 = vadd.f32 %v375_v4, %v367_v57 }
  0xe0   :  { %v307_v11 = vmax.f32 %v305_v63, %v306_v3  ;;  %v243_v13 = vpop.f32.mrf.mxu0  ;;  %v297_v14 = vmax.f32 %v295_v61, %v296_v6  ;;  %v302_v15 = vmax.f32 %v300_v58, %v301_v2 }
  0xe1   :  { %v312_v16 = vsel %vm290_vm1, %v289_v7, -inf  ;;  %v400_v18 = vmax.f32 %v396_v8, 0.0  ;;  %v386_v17 = vadd.f32 %v378_v10, %v370_v9  ;;  %v376_v19 = vrot.slane %v243_v13, 2 }
  0xe2   :  { %v308_v20 = vrot.slane %v307_v11, 2  ;;  %v313_v21 = vrot.slane %v312_v16, 4  ;;  %v394_v22 = vadd.f32 %v490_v59, %v383_v12  ;;  %v303_v23 = vrot.slane %v302_v15, 1 }
  0xe3   :  { %v417_v24 = vsel %vm402_vm2, %v400_v18, -inf  ;;  %v397_v25 = vadd.f32 %v490_v59, %v386_v17  ;;  %v384_v26 = vadd.f32 %v376_v19, %v368_v62  ;;  %v331_v33 = vmul.f32 %v297_v14, %v297_v14 }
  0xe4   :  { %v314_v27 = vmax.f32 %v312_v16, %v313_v21  ;;  %v418_v28 = vrot.slane %v417_v24, 4  ;;  %v398_v29 = vmax.f32 %v394_v22, 0.0  ;;  %v304_v30 = vmax.f32 %v302_v15, %v303_v23 }
  0xe5   :  { %v401_v31 = vmax.f32 %v397_v25, 0.0  ;;  %v395_v32 = vadd.f32 %v490_v59, %v384_v26  ;;  %v309_v34 = vmax.f32 %v307_v11, %v308_v20 }
  0xe6   :  { %v315_v35 = vrot.slane %v314_v27, 2  ;;  %v419_v36 = vmax.f32 %v417_v24, %v418_v28  ;;  %v403_v37 = vsel %vm402_vm2, %v398_v29, -inf  ;;  %v332_v38 = vmul.f32 %v304_v30, %v304_v30 }
  0xe7   :  { %v404_v39 = vrot.slane %v403_v37, 4  ;;  %v424_v40 = vsel %vm402_vm2, %v401_v31, -inf  ;;  %v399_v41 = vmax.f32 %v395_v32, 0.0  ;;  %v310_v42 = vrot.slane %v309_v34, 1 }
  0xe8   :  { %v420_v43 = vrot.slane %v419_v36, 2  ;;  %v425_v44 = vrot.slane %v424_v40, 4  ;;  %v335_v45 = vsel %vm323_vm3, %v332_v38, %v331_v33  ;;  %v316_v46 = vmax.f32 %v314_v27, %v315_v35 }
  0xe9   :  { %v405_v47 = vmax.f32 %v403_v37, %v404_v39  ;;  %v410_v48 = vsel %vm402_vm2, %v399_v41, -inf  ;;  %v337_v49 = vsel %vm326_vm4, %v335_v45, 0.0  ;;  %v311_v52 = vmax.f32 %v309_v34, %v310_v42 }
  0xea   :  { %v426_v50 = vmax.f32 %v424_v40, %v425_v44  ;;  %v411_v51 = vrot.slane %v410_v48, 4  ;;  %338 = vadd.xlane.f32.xlu0 %v337_v49  ;;  %v317_v53 = vrot.slane %v316_v46, 1  ;;  %v421_v58 = vmax.f32 %v419_v36, %v420_v43 }
  0xeb   :  { %v406_v54 = vrot.slane %v405_v47, 2  ;;  %v341_v61 = vmul.f32 %v311_v52, %v311_v52  ;;  %v319_v3 = vmul.f32 %v311_v52, %v297_v14 }
  0xec   :  { %v427_v55 = vrot.slane %v426_v50, 2  ;;  %v412_v56 = vmax.f32 %v410_v48, %v411_v51  ;;  %v318_v57 = vmax.f32 %v316_v46, %v317_v53  ;;  %v422_v5 = vrot.slane %v421_v58, 1 }
  0xed   :  { %v407_v59 = vmax.f32 %v405_v47, %v406_v54 }
  0xee   :  { %v413_v60 = vrot.slane %v412_v56, 2  ;;  %v342_v62 = vmul.f32 %v318_v57, %v318_v57  ;;  %v320_v63 = vmul.f32 %v318_v57, %v304_v30  ;;  %v428_v1 = vmax.f32 %v426_v50, %v427_v55 }
  0xef   :  { %v408_v0 = vrot.slane %v407_v59, 1  ;;  %v423_v13 = vmax.f32 %v421_v58, %v422_v5 }
  0xf0   :  { %v345_v2 = vsel %vm323_vm3, %v342_v62, %v341_v61  ;;  %v414_v4 = vmax.f32 %v412_v56, %v413_v60  ;;  %v429_v7 = vrot.slane %v428_v1, 1  ;;  %v324_v8 = vsel %vm323_vm3, %v320_v63, %v319_v3 }
  0xf1   :  { %v347_v6 = vsel %vm326_vm4, %v345_v2, 0.0  ;;  %v409_v9 = vmax.f32 %v407_v59, %v408_v0  ;;  %v327_v15 = vsel %vm326_vm4, %v324_v8, 0.0  ;;  %v451_v19 = vmul.f32 %v423_v13, %v423_v13 }
  0xf2   :  { %348 = vadd.xlane.f32.xlu0 %v347_v6  ;;  %v415_v10 = vrot.slane %v414_v4, 1  ;;  %v430_v11 = vmax.f32 %v428_v1, %v429_v7 }
  0xf3   :  { %v441_v16 = vmul.f32 %v409_v9, %v409_v9  ;;  %v431_v23 = vmul.f32 %v423_v13, %v409_v9 }
  0xf4   :  { %v416_v12 = vmax.f32 %v414_v4, %v415_v10  ;;  %v452_v17 = vmul.f32 %v430_v11, %v430_v11 }
  0xf6   :  { %328 = vadd.xlane.f32.xlu0 %v327_v15  ;;  %v442_v18 = vmul.f32 %v416_v12, %v416_v12  ;;  %v455_v21 = vsel %vm323_vm3, %v452_v17, %v451_v19  ;;  %v432_v22 = vmul.f32 %v430_v11, %v416_v12 }
  0xf7   :  { %v457_v24 = vsel %vm326_vm4, %v455_v21, 0.0 }
  0xf8   :  { %v445_v14 = vsel %vm323_vm3, %v442_v18, %v441_v16  ;;  %v435_v25 = vsel %vm323_vm3, %v432_v22, %v431_v23 }
  0xf9   :  { %v447_v20 = vsel %vm326_vm4, %v445_v14, 0.0  ;;  %v437_v26 = vsel %vm326_vm4, %v435_v25, 0.0 }
  0xfa   :  { %448 = vadd.xlane.f32.xlu1 %v447_v20 }
  0xfe   :  { %458 = vadd.xlane.f32.xlu1 %v457_v24 }
 0x102   :  { %438 = vadd.xlane.f32.xlu1 %v437_v26 }
 0x173   :  { %v339_v27 = vpop.xlane.xlu0 %338 }
 0x17b   :  { %v349_v29 = vpop.xlane.xlu0 %348 }
 0x17f   :  { %v329_v36 = vpop.xlane.xlu0 %328 }
 0x183   :  { %v449_v28 = vpop.xlane.xlu1 %448 }
 0x184   :  { %v450_v31 = vadd.f32 %v449_v28, %v339_v27 }
 0x187   :  { %v459_v30 = vpop.xlane.xlu1 %458 }
 0x188   :  { %v460_v32 = vadd.f32 %v459_v30, %v349_v29 }
 0x18a   :  { %v461_v33 = vmul.f32 %v460_v32, %v450_v31 }
 0x18b   :  { %v439_v35 = vpop.xlane.xlu1 %438 }
 0x18c   :  { %v462_v34 = vmax.f32 %v461_v33, 1e-14  ;;  %v440_v37 = vadd.f32 %v439_v35, %v329_v36 }
 0x18e   :  { %520 = vrsqrt.f32 %v462_v34 }
 0x19b   :  { %v521_v38 = vpop.eup %520 }
 0x19c   :  { %v464_v39 = vmul.f32 %v521_v38, %v440_v37 }
 0x19e   :  { %466 = vst.msk [vmem:[%s617_s3] sm:$0x3] %vm465_vm5, %v464_v39 }

</bundles_post_ra>
